<compile_context>
chip_gen: v5e
topology: v5e:2x2
jax: 0.10.0
libtpu: 0.0.40
codegen_flags: <defaults>
</compile_context>

<pallas_src>
import jax
import jax.numpy as jnp
from jax.experimental import pallas as pl
from jax.experimental.pallas import tpu as pltpu


def _round_up(n, m):
    return ((n + m - 1) // m) * m


def jepa_predictor_kernel(x_ref, w1_ref, dyt_ref, w2_ref, b2_ref, o_ref):
    # x streamed as f32, cast to bf16 on the VPU for the bf16 MXU path.
    x = x_ref[...].astype(jnp.bfloat16)
    # h = x @ W1^T   (bf16 operands, f32 accumulation on the MXU)
    h = jnp.dot(x, w1_ref[...], preferred_element_type=jnp.float32)
    # Packed constants: rows = [b1, scale, shift, alpha], all (1, dim2).
    dyt = dyt_ref[...]
    b1, scale, shift, alpha = dyt[0:1], dyt[1:2], dyt[2:3], dyt[3:4]
    h = h + b1
    # DyTanh in f32 (VPU + EUP): scale * tanh(alpha * h) + shift
    h = scale * jnp.tanh(alpha * h) + shift
    # out = h @ W2^T + b2   (activation cast to bf16 for the MXU)
    out = jnp.dot(h.astype(jnp.bfloat16), w2_ref[...],
                  preferred_element_type=jnp.float32)
    o_ref[...] = (out + b2_ref[...]).astype(o_ref.dtype)


def _choose_tile_b(B, max_tile=256):
    """Batch tile: lane/sublane-dense, bounded pad waste, >=2 steps when useful."""
    if B > max_tile:
        # Spread B evenly over the minimum number of steps so the ragged last
        # tile wastes at most ~8 rows instead of up to (max_tile - 1).
        n_steps = pl.cdiv(B, max_tile)
        return _round_up(pl.cdiv(B, n_steps), 8)
    if B >= 32:
        # At least two grid steps so ("parallel",) can shard across the two
        # TensorCores on v7x.
        half = _round_up(pl.cdiv(B, 2), 8)
        if half < B:
            return half
    # Tiny batch: one step over the full batch (block == full dim is legal
    # even when B is not a multiple of 8).
    return B


def jepa_predictor(x, params, *, max_tile_b=256):
    """x: (B, dim1) float32. params: dict of kernel parameters (weights bf16)."""
    B, dim1 = x.shape
    dim2 = params["w1_t"].shape[1]

    tile_b = _choose_tile_b(B, max_tile_b)
    grid = (pl.cdiv(B, tile_b),)

    # Constant operands: index_map never changes -> single-buffer them.
    const = lambda shape: pl.BlockSpec(shape, lambda i: (0, 0),
                                       pipeline_mode=pl.Buffered(1))

    # VMEM budget (resident bf16 weights + double-buffered f32 x/out tiles
    # + f32 intermediates). Always pass an explicit limit: the v5e scoped
    # default is only 16 MiB; cap below v7x's 64 MiB physical VMEM per TC.
    vmem_bytes = (
        2 * dim1 * dim2 * 2                  # W1^T + W2^T (bf16, 1-buffered)
        + (4 * dim2 + dim1) * 4              # packed DyTanh consts + b2 (f32)
        + 2 * tile_b * dim1 * 4              # x tile, double-buffered f32
        + 2 * tile_b * dim1 * 4              # out tile, double-buffered f32
        + 2 * tile_b * dim2 * 4              # h intermediate headroom (f32)
    )
    vmem_limit = int(min(max(2 * vmem_bytes, 32 << 20), 48 << 20))

    cost = pl.CostEstimate(
        flops=4 * B * dim1 * dim2,                 # two matmuls
        transcendentals=B * dim2,                  # tanh
        bytes_accessed=(B * dim1 * 4               # x read (f32)
                        + 2 * dim1 * dim2 * 2      # weights (bf16)
                        + (4 * dim2 + dim1) * 4    # packed consts + b2
                        + B * dim1 * 4),           # out write (f32)
    )

    return pl.pallas_call(
        jepa_predictor_kernel,
        out_shape=jax.ShapeDtypeStruct((B, dim1), jnp.float32),
        grid_spec=pltpu.PrefetchScalarGridSpec(
            num_scalar_prefetch=0,
            grid=grid,
            in_specs=[
                pl.BlockSpec((tile_b, dim1), lambda i: (i, 0)),  # x (f32)
                const((dim1, dim2)),                             # W1^T (bf16)
                const((4, dim2)),                                # b1/scale/shift/alpha
                const((dim2, dim1)),                             # W2^T (bf16)
                const((1, dim1)),                                # b2
            ],
            out_specs=pl.BlockSpec((tile_b, dim1), lambda i: (i, 0)),
        ),
        compiler_params=pltpu.CompilerParams(
            dimension_semantics=("parallel",),
            vmem_limit_bytes=vmem_limit),
        cost_estimate=cost,
    )(x, params["w1_t"], params["dyt"], params["w2_t"], params["b2"])


def init_params(key, input_size):
    """Deterministic synthetic init mirroring the PyTorch module's shapes."""
    dim1, dim2 = input_size, input_size // 2
    ks = jax.random.split(key, 7)
    # nn.init.normal_(weight, mean=0.0, std=0.001)
    w1 = jax.random.normal(ks[0], (dim2, dim1), jnp.float32) * 0.001
    w2 = jax.random.normal(ks[1], (dim1, dim2), jnp.float32) * 0.001
    # Linear biases: deterministic small normal (synthetic stand-in for torch default)
    b1 = jax.random.normal(ks[2], (dim2,), jnp.float32) * 0.001
    b2 = jax.random.normal(ks[3], (dim1,), jnp.float32) * 0.001
    # DyTanh params: randn * 0.001 + 0.1
    scale = jax.random.normal(ks[4], (dim2,), jnp.float32) * 0.001 + 0.1
    shift = jax.random.normal(ks[5], (dim2,), jnp.float32) * 0.001 + 0.1
    alpha = jax.random.normal(ks[6], (dim2,), jnp.float32) * 0.001 + 0.1
    return {
        "w1_t": w1.T.astype(jnp.bfloat16),                   # (dim1, dim2)
        "w2_t": w2.T.astype(jnp.bfloat16),                   # (dim2, dim1)
        "dyt": jnp.stack([b1, scale, shift, alpha], axis=0),  # (4, dim2) f32
        "b2": b2.reshape(1, dim1),                            # (1, dim1) f32
    }


def reference(x, p):
    """f32 reference using the same bf16-quantized operands the kernel sees."""
    xf = x.astype(jnp.bfloat16).astype(jnp.float32)
    w1 = p["w1_t"].astype(jnp.float32)
    w2 = p["w2_t"].astype(jnp.float32)
    b1, scale, shift, alpha = (p["dyt"][i:i + 1] for i in range(4))
    h = xf @ w1 + b1
    h = scale * jnp.tanh(alpha * h) + shift
    h = h.astype(jnp.bfloat16).astype(jnp.float32)   # kernel casts h to bf16
    return h @ w2 + p["b2"]


if __name__ == "__main__":
    key = jax.random.PRNGKey(0)
    kx, kp = jax.random.split(key)

    input_size = 256          # dim1 = 256, dim2 = 128 (TPU lane-friendly)
    params = init_params(kp, input_size)

    # Small demo shape: single grid step, block == full batch.
    batch = 16
    x = jax.random.normal(kx, (batch, input_size), jnp.float32)
    out = jax.block_until_ready(jepa_predictor(x, params))
    ref = reference(x, params)
    assert out.shape == (batch, input_size)
    assert jnp.allclose(out, ref, atol=1e-4, rtol=1e-2)

    # Ragged-batch path: 2 grid steps with a masked partial last tile.
    batch2 = 40
    x2 = jax.random.normal(jax.random.PRNGKey(1), (batch2, input_size),
                           jnp.float32)
    out2 = jax.block_until_ready(jepa_predictor(x2, params))
    ref2 = reference(x2, params)
    assert out2.shape == (batch2, input_size)
    assert jnp.allclose(out2, ref2, atol=1e-4, rtol=1e-2)

    print("KERNEL_OK")
</pallas_src>

<mosaic_0001>
module attributes {stable_mosaic.version = 11 : i64} {
  func.func @jepa_predictor_kernel(%arg0: i32, %arg1: memref<16x256xf32, #tpu.memory_space<vmem>>, %arg2: memref<256x128xbf16, #tpu.memory_space<vmem>>, %arg3: memref<4x128xf32, #tpu.memory_space<vmem>>, %arg4: memref<128x256xbf16, #tpu.memory_space<vmem>>, %arg5: memref<1x256xf32, #tpu.memory_space<vmem>>, %arg6: memref<16x256xf32, #tpu.memory_space<vmem>>) attributes {dimension_semantics = [#tpu.dimension_semantics<parallel>], iteration_bounds = array<i64: 1>, scalar_prefetch = 0 : i64, scratch_operands = 0 : i64, tpu.core_type = #tpu.core_type<tc>, window_params = [{transform_indices = @transform_0, window_bounds = array<i64: 16, 256>}, {pipeline_mode = #tpu.pipeline_mode<synchronous>, transform_indices = @transform_1, window_bounds = array<i64: 256, 128>}, {pipeline_mode = #tpu.pipeline_mode<synchronous>, transform_indices = @transform_2, window_bounds = array<i64: 4, 128>}, {pipeline_mode = #tpu.pipeline_mode<synchronous>, transform_indices = @transform_3, window_bounds = array<i64: 128, 256>}, {pipeline_mode = #tpu.pipeline_mode<synchronous>, transform_indices = @transform_4, window_bounds = array<i64: 1, 256>}, {transform_indices = @transform_5, window_bounds = array<i64: 16, 256>}]} {
    %c0 = arith.constant 0 : index
    %c0_0 = arith.constant 0 : index
    %0 = vector.load %arg1[%c0, %c0_0] : memref<16x256xf32, #tpu.memory_space<vmem>>, vector<16x256xf32>
    %1 = arith.truncf %0 : vector<16x256xf32> to vector<16x256xbf16>
    %c0_1 = arith.constant 0 : index
    %c0_2 = arith.constant 0 : index
    %2 = vector.load %arg2[%c0_1, %c0_2] : memref<256x128xbf16, #tpu.memory_space<vmem>>, vector<256x128xbf16>
    %cst = arith.constant dense<0.000000e+00> : vector<16x128xf32>
    %3 = tpu.matmul %1, %2, %cst {dimension_numbers = #tpu.dot_dimension_numbers<[1], [0], [0], [1], [0, 0, 1, 1], [], []>} : vector<16x256xbf16>, vector<256x128xbf16>, vector<16x128xf32> -> vector<16x128xf32>
    %c0_3 = arith.constant 0 : index
    %c0_4 = arith.constant 0 : index
    %4 = vector.load %arg3[%c0_3, %c0_4] : memref<4x128xf32, #tpu.memory_space<vmem>>, vector<4x128xf32>
    %5 = vector.extract_strided_slice %4 {offsets = [0, 0], sizes = [1, 128], strides = [1, 1]} : vector<4x128xf32> to vector<1x128xf32>
    %6 = vector.extract_strided_slice %4 {offsets = [1, 0], sizes = [1, 128], strides = [1, 1]} : vector<4x128xf32> to vector<1x128xf32>
    %7 = vector.extract_strided_slice %4 {offsets = [2, 0], sizes = [1, 128], strides = [1, 1]} : vector<4x128xf32> to vector<1x128xf32>
    %8 = vector.extract_strided_slice %4 {offsets = [3, 0], sizes = [1, 128], strides = [1, 1]} : vector<4x128xf32> to vector<1x128xf32>
    %9 = vector.broadcast %5 : vector<1x128xf32> to vector<16x128xf32>
    %10 = arith.addf %3, %9 : vector<16x128xf32>
    %11 = vector.broadcast %8 : vector<1x128xf32> to vector<16x128xf32>
    %12 = arith.mulf %11, %10 : vector<16x128xf32>
    %13 = math.tanh %12 : vector<16x128xf32>
    %14 = vector.broadcast %6 : vector<1x128xf32> to vector<16x128xf32>
    %15 = arith.mulf %14, %13 : vector<16x128xf32>
    %16 = vector.broadcast %7 : vector<1x128xf32> to vector<16x128xf32>
    %17 = arith.addf %15, %16 : vector<16x128xf32>
    %18 = arith.truncf %17 : vector<16x128xf32> to vector<16x128xbf16>
    %c0_5 = arith.constant 0 : index
    %c0_6 = arith.constant 0 : index
    %19 = vector.load %arg4[%c0_5, %c0_6] : memref<128x256xbf16, #tpu.memory_space<vmem>>, vector<128x256xbf16>
    %cst_7 = arith.constant dense<0.000000e+00> : vector<16x256xf32>
    %20 = tpu.matmul %18, %19, %cst_7 {dimension_numbers = #tpu.dot_dimension_numbers<[1], [0], [0], [1], [0, 0, 1, 1], [], []>} : vector<16x128xbf16>, vector<128x256xbf16>, vector<16x256xf32> -> vector<16x256xf32>
    %c0_8 = arith.constant 0 : index
    %c0_9 = arith.constant 0 : index
    %21 = vector.load %arg5[%c0_8, %c0_9] : memref<1x256xf32, #tpu.memory_space<vmem>>, vector<1x256xf32>
    %22 = vector.broadcast %21 : vector<1x256xf32> to vector<16x256xf32>
    %23 = arith.addf %20, %22 : vector<16x256xf32>
    %c0_10 = arith.constant 0 : index
    %c0_11 = arith.constant 0 : index
    %24 = vector.load %arg6[%c0_10, %c0_11] : memref<16x256xf32, #tpu.memory_space<vmem>>, vector<16x256xf32>
    tpu.vector_store %arg6[%c0_10, %c0_11], %23 {strides = array<i32>} : memref<16x256xf32, #tpu.memory_space<vmem>>, vector<16x256xf32>,
    return
  }
  func.func @transform_0(%arg0: i32) -> (i32, i32) {
    %c0_i32 = arith.constant 0 : i32
    %c0_i32_0 = arith.constant 0 : i32
    return %arg0, %c0_i32 : i32, i32
  }
  func.func @transform_1(%arg0: i32) -> (i32, i32) {
    %c0_i32 = arith.constant 0 : i32
    %c0_i32_0 = arith.constant 0 : i32
    %c0_i32_1 = arith.constant 0 : i32
    return %c0_i32, %c0_i32_0 : i32, i32
  }
  func.func @transform_2(%arg0: i32) -> (i32, i32) {
    %c0_i32 = arith.constant 0 : i32
    %c0_i32_0 = arith.constant 0 : i32
    %c0_i32_1 = arith.constant 0 : i32
    return %c0_i32, %c0_i32_0 : i32, i32
  }
  func.func @transform_3(%arg0: i32) -> (i32, i32) {
    %c0_i32 = arith.constant 0 : i32
    %c0_i32_0 = arith.constant 0 : i32
    %c0_i32_1 = arith.constant 0 : i32
    return %c0_i32, %c0_i32_0 : i32, i32
  }
  func.func @transform_4(%arg0: i32) -> (i32, i32) {
    %c0_i32 = arith.constant 0 : i32
    %c0_i32_0 = arith.constant 0 : i32
    %c0_i32_1 = arith.constant 0 : i32
    return %c0_i32, %c0_i32_0 : i32, i32
  }
  func.func @transform_5(%arg0: i32) -> (i32, i32) {
    %c0_i32 = arith.constant 0 : i32
    %c0_i32_0 = arith.constant 0 : i32
    return %arg0, %c0_i32 : i32, i32
  }
}

</mosaic_0001>

<bundles_post_ra>
// kernel: tpu_custom_call.1
= control target key start
LH: loop header
LB: loop body
LE: loop exit
PB: predicated region body
PF: predicated region fallthrough
CT: control target
= control target key end

     0   :  { %10 = vsyncpa [#allocation3], 0  ;;  %s781_s0 = inlined_call_operand.hbm [shape: f32[16,256], index: 0, kind: input, shape index: {}]   ;;  %s782_s1 = inlined_call_operand.hbm [shape: bf16[256,128], index: 1, kind: input, shape index: {}]   ;;  %s783_s2 = inlined_call_operand.hbm [shape: f32[4,128], index: 2, kind: input, shape index: {}]   ;;  %s784_s3 = inlined_call_operand.hbm [shape: bf16[128,256], index: 3, kind: input, shape index: {}]   ;;  %s785_s4 = inlined_call_operand.vmem [shape: f32[1,256], index: 4, kind: input, shape index: {}]   ;;  %s786_s5 = inlined_call_operand.hbm [shape: f32[16,256], index: 5, kind: output, shape index: {}]  }
   0x1   :  { %11 = vsyncpa [#allocation6], 0 }
   0x2   :  { %12 = vsyncpa [#allocation9], 0  ;;  %s31_s20 = sshll.u32 %s782_s1, 4  ;;  %s32_s20 = int_to_ptr.hbm [resolvable:$true] %s31_s20 }
   0x3   :  { %13 = vsyncpa [#allocation4], 0  ;;  %s716_s21 = smov [#allocation5]   ;;  %s18_s25 = sshll.u32 %s781_s0, 4  ;;  %s19_s25 = int_to_ptr.hbm [resolvable:$true] %s18_s25 }
   0x4   :  { %s33_s22 = sshll.u32 %s716_s21, 4  ;;  %s717_s26 = smov 64   ;;  %s34_s22 = int_to_ptr.vmem [resolvable:$true] %s33_s22 }
   0x5   :  { %s718_s27 = smov 4   ;;  %s719_s28 = smov [#allocation2]  }
   0x6   :  { %39 = dma.hbm_to_vmem [thread:$0]  %s32_s20, 2048, %s34_s22, [#allocation6], %s717_s26, %s717_s26, %s718_s27  }
   0x7   :  { %s20_s29 = sshll.u32 %s719_s28, 4  ;;  %s720_s30 = smov 256   ;;  %s21_s29 = int_to_ptr.vmem [resolvable:$true] %s20_s29 }
   0x8   :  { %s721_s6 = smov 16   ;;  %s45_s8 = sshll.u32 %s783_s2, 4  ;;  %s46_s8 = int_to_ptr.hbm [resolvable:$true] %s45_s8 }
   0x9   :  { %26 = dma.hbm_to_vmem [thread:$0]  %s19_s25, 512, %s21_s29, [#allocation3], %s720_s30, %s720_s30, %s721_s6  }
   0xa   :  { %s722_s9 = smov [#allocation7]   ;;  %s55_s12 = sshll.u32 %s784_s3, 4  ;;  %s56_s12 = int_to_ptr.hbm [resolvable:$true] %s55_s12 }
   0xb   :  { %s47_s0 = sshll.u32 %s722_s9, 4  ;;  %s723_s13 = smov [#allocation8]   ;;  %s48_s0 = int_to_ptr.vmem [resolvable:$true] %s47_s0 }
   0xc   :  { %50 = dma.hbm_to_vmem [thread:$0]  %s46_s8, 64, %s48_s0, [#allocation6]  }
   0xd   :  { %s57_s14 = sshll.u32 %s723_s13, 4  ;;  %s724_s15 = smov 128   ;;  %s58_s14 = int_to_ptr.vmem [resolvable:$true] %s57_s14 }
   0xe   :  { %s725_s16 = smov 8  }
   0xf   :  { %63 = dma.hbm_to_vmem [thread:$0]  %s56_s12, 2048, %s58_s14, [#allocation9], %s724_s15, %s724_s15, %s725_s16  }
  0x10   :  { %708 = dma.done.wait [#allocation3], 512  }
  0x11   :  { %709 = vsyncadd [#allocation3], 4294966784 }
  0x12   :  { %710 = dma.done.wait [#allocation6], 2112  }
  0x13   :  { %711 = vsyncadd [#allocation6], 4294965184 }
  0x14   :  { %712 = dma.done.wait [#allocation9], 2048  }
  0x15   :  { %713 = vsyncadd [#allocation9], 4294965248  ;;  %v548_v0 = vld [vmem:[#allocation5 + $0x38] sm:$0xff]  ;;  %v547_v2 = vld [vmem:[#allocation5 + $0x30] sm:$0xff]  ;;  %s726_s17 = smov [#allocation10]   ;;  %s398_s21 = sshll.u32 %s786_s5, 4  ;;  %s399_s21 = int_to_ptr.hbm [resolvable:$true] %s398_s21 }
  0x16   :  { %v556_v1 = vld [vmem:[#allocation5 + $0x78] sm:$0xff]  ;;  %218 = vmatpush.bf16.msra.mxu0 %v548_v0  ;;  %v555_v3 = vld [vmem:[#allocation5 + $0x70] sm:$0xff]  ;;  %v546_v4 = vld [vmem:[#allocation5 + $0x28] sm:$0xff]  ;;  %s396_s18 = sshll.u32 %s726_s17, 4  ;;  %s397_s18 = int_to_ptr.vmem [resolvable:$true] %s396_s18 }
  0x17   :  { %232 = vmatpush.bf16.msra.mxu1 %v556_v1  ;;  %v554_v5 = vld [vmem:[#allocation5 + $0x68] sm:$0xff]  ;;  %v535_v6 = vld [vmem:[#allocation8 + $0x70] sm:$0xf]  ;;  %v572_v7 = vld [vmem:[#allocation8 + $0x74] sm:$0xf0] }
  0x18   :  { %v571_v8 = vld [vmem:[#allocation8 + $0x74] sm:$0xf]  ;;  %v537_v9 = vld [vmem:[#allocation8 + $0x78] sm:$0xf0]  ;;  %v536_v10 = vor.u32 %v572_v7, %v535_v6  ;;  %v543_v16 = vld [vmem:[#allocation5 + $0x10] sm:$0xff] }
  0x19   :  { %v540_v11 = vor.u32 %v571_v8, %v537_v9  ;;  %v545_v12 = vld [vmem:[#allocation5 + $0x20] sm:$0xff]  ;;  %v544_v14 = vld [vmem:[#allocation5 + $0x18] sm:$0xff]  ;;  %v551_v17 = vld [vmem:[#allocation5 + $0x50] sm:$0xff] }
  0x1a   :  { %219 = vmatpush.bf16.msra.mxu0 %v547_v2  ;;  %v553_v13 = vld [vmem:[#allocation5 + $0x60] sm:$0xff]  ;;  %360 = vmatpush.bf16.msra.mxu2 %v536_v10  ;;  %v552_v15 = vld [vmem:[#allocation5 + $0x58] sm:$0xff]  ;;  %v542_v18 = vld [vmem:[#allocation5 + $0x8] sm:$0xff] }
  0x1b   :  { %233 = vmatpush.bf16.msra.mxu1 %v555_v3  ;;  %374 = vmatpush.bf16.msra.mxu3 %v540_v11  ;;  %v550_v19 = vld [vmem:[#allocation5 + $0x48] sm:$0xff]  ;;  %v541_v20 = vld [vmem:[#allocation5] sm:$0xff]  ;;  %v84_v23 = vld [vmem:[#allocation2 + $0x10] sm:$0xff] }
  0x1c   :  { %v549_v21 = vld [vmem:[#allocation5 + $0x40] sm:$0xff]  ;;  %v83_v24 = vld [vmem:[#allocation2 + $0x8] sm:$0xff]  ;;  %v85_v25 = vld [vmem:[#allocation2 + $0x18] sm:$0xff] }
  0x1d   :  { %v82_v22 = vld [vmem:[#allocation2] sm:$0xff]  ;;  %v87_v27 = vpack.c.bf16 %v85_v25, %v83_v24  ;;  %v570_v29 = vld [vmem:[#allocation8 + $0x64] sm:$0xf0]  ;;  %v569_v30 = vld [vmem:[#allocation8 + $0x64] sm:$0xf] }
  0x1e   :  { %220 = vmatpush.bf16.msra.mxu0 %v546_v4  ;;  %v86_v26 = vpack.c.bf16 %v84_v23, %v82_v22  ;;  %v527_v28 = vld [vmem:[#allocation8 + $0x60] sm:$0xf]  ;;  %v529_v32 = vld [vmem:[#allocation8 + $0x68] sm:$0xf0]  ;;  %v519_v34 = vld [vmem:[#allocation8 + $0x50] sm:$0xf] }
  0x1f   :  { %234 = vmatpush.bf16.msra.mxu1 %v554_v5  ;;  %v528_v31 = vor.u32 %v570_v29, %v527_v28  ;;  %v532_v33 = vor.u32 %v569_v30, %v529_v32  ;;  %v568_v35 = vld [vmem:[#allocation8 + $0x54] sm:$0xf0]  ;;  %v567_v36 = vld [vmem:[#allocation8 + $0x54] sm:$0xf]  ;;  %v521_v38 = vld [vmem:[#allocation8 + $0x58] sm:$0xf0] }
  0x20   :  { %v520_v37 = vor.u32 %v568_v35, %v519_v34  ;;  %v524_v39 = vor.u32 %v567_v36, %v521_v38  ;;  %v511_v40 = vld [vmem:[#allocation8 + $0x40] sm:$0xf]  ;;  %v566_v41 = vld [vmem:[#allocation8 + $0x44] sm:$0xf0]  ;;  %v565_v42 = vld [vmem:[#allocation8 + $0x44] sm:$0xf] }
  0x21   :  { %361 = vmatpush.bf16.msra.mxu2 %v528_v31  ;;  %375 = vmatpush.bf16.msra.mxu3 %v532_v33  ;;  %v512_v43 = vor.u32 %v566_v41, %v511_v40  ;;  %v513_v44 = vld [vmem:[#allocation8 + $0x48] sm:$0xf0]  ;;  %v503_v46 = vld [vmem:[#allocation8 + $0x30] sm:$0xf]  ;;  %v564_v47 = vld [vmem:[#allocation8 + $0x34] sm:$0xf0] }
  0x22   :  { %221 = vmatpush.bf16.msra.mxu0 %v545_v12  ;;  %v516_v45 = vor.u32 %v565_v42, %v513_v44  ;;  %v563_v48 = vld [vmem:[#allocation8 + $0x34] sm:$0xf]  ;;  %v504_v49 = vor.u32 %v564_v47, %v503_v46  ;;  %v505_v50 = vld [vmem:[#allocation8 + $0x38] sm:$0xf0]  ;;  %v495_v52 = vld [vmem:[#allocation8 + $0x20] sm:$0xf] }
  0x23   :  { %235 = vmatpush.bf16.msra.mxu1 %v553_v13  ;;  %v508_v51 = vor.u32 %v563_v48, %v505_v50  ;;  %v562_v53 = vld [vmem:[#allocation8 + $0x24] sm:$0xf0]  ;;  %v561_v54 = vld [vmem:[#allocation8 + $0x24] sm:$0xf]  ;;  %v497_v56 = vld [vmem:[#allocation8 + $0x28] sm:$0xf0] }
  0x24   :  { %v496_v55 = vor.u32 %v562_v53, %v495_v52  ;;  %v487_v57 = vld [vmem:[#allocation8 + $0x10] sm:$0xf]  ;;  %v560_v58 = vld [vmem:[#allocation8 + $0x14] sm:$0xf0]  ;;  %v500_v59 = vor.u32 %v561_v54, %v497_v56  ;;  %v559_v60 = vld [vmem:[#allocation8 + $0x14] sm:$0xf] }
  0x25   :  { %362 = vmatpush.bf16.msra.mxu2 %v520_v37  ;;  %376 = vmatpush.bf16.msra.mxu3 %v524_v39  ;;  %v489_v61 = vld [vmem:[#allocation8 + $0x18] sm:$0xf0]  ;;  %v488_v62 = vor.u32 %v560_v58, %v487_v57  ;;  %v479_v0 = vld [vmem:[#allocation8] sm:$0xf]  ;;  %v558_v1 = vld [vmem:[#allocation8 + $0x4] sm:$0xf0] }
  0x26   :  { %222 = vmatpush.bf16.msra.mxu0 %v544_v14  ;;  %v492_v63 = vor.u32 %v559_v60, %v489_v61  ;;  %v557_v2 = vld [vmem:[#allocation8 + $0x4] sm:$0xf]  ;;  %v481_v3 = vld [vmem:[#allocation8 + $0x8] sm:$0xf0]  ;;  %v480_v4 = vor.u32 %v558_v1, %v479_v0  ;;  %v120_v6 = vld [vmem:[#allocation7] sm:$0xf] }
  0x27   :  { %236 = vmatpush.bf16.msra.mxu1 %v552_v15  ;;  %v484_v5 = vor.u32 %v557_v2, %v481_v3  ;;  %v121_v7 = vperm.slane %v120_v6, 0  ;;  %v246_v12 = vperm.slane %v120_v6, 3  ;;  %v254_v22 = vperm.slane %v120_v6, 2  ;;  %v274_v28 = vld [vmem:[%s785_s4] sm:$0x3] }
  0x28   :  { %v276_v29 = vperm.slane %v274_v28, 0  ;;  %v277_v30 = vperm.slane %v274_v28, 1 }
  0x29   :  { %363 = vmatpush.bf16.msra.mxu2 %v512_v43  ;;  %377 = vmatpush.bf16.msra.mxu3 %v516_v45 }
  0x2a   :  { %223 = vmatpush.bf16.msra.mxu0 %v543_v16 }
  0x2b   :  { %237 = vmatpush.bf16.msra.mxu1 %v551_v17 }
  0x2d   :  { %364 = vmatpush.bf16.msra.mxu2 %v504_v49  ;;  %378 = vmatpush.bf16.msra.mxu3 %v508_v51 }
  0x2e   :  { %224 = vmatpush.bf16.msra.mxu0 %v542_v18 }
  0x2f   :  { %238 = vmatpush.bf16.msra.mxu1 %v550_v19  ;;  %v251_v19 = vperm.slane %v120_v6, 1 }
  0x31   :  { %365 = vmatpush.bf16.msra.mxu2 %v496_v55  ;;  %379 = vmatpush.bf16.msra.mxu3 %v500_v59 }
  0x32   :  { %225 = vmatpush.bf16.msra.mxu0 %v541_v20 }
  0x33   :  { %239 = vmatpush.bf16.msra.mxu1 %v549_v21 }
  0x35   :  { %226 = vmatmul.bf16.vlgmr.msra.gmra.mxu0 %v86_v26  ;;  %366 = vmatpush.bf16.msra.mxu2 %v488_v62 }
  0x36   :  { %240 = vmatmul.bf16.vlgmr.msra.gmra.mxu1 %v87_v27  ;;  %380 = vmatpush.bf16.msra.mxu3 %v492_v63 }
  0x39   :  { %367 = vmatpush.bf16.msra.mxu2 %v480_v4 }
  0x3a   :  { %381 = vmatpush.bf16.msra.mxu3 %v484_v5 }
  0xb2   :  { %v227_v8 = vpop.f32.mrf.mxu0 }
  0xb3   :  { %v241_v9 = vpop.f32.mrf.mxu1  ;;  %v228_v10 = vadd.f32 %v227_v8, %v121_v7 }
  0xb5   :  { %v242_v11 = vadd.f32 %v241_v9, %v228_v10 }
  0xb7   :  { %v247_v13 = vmul.f32 %v246_v12, %v242_v11 }
  0xb9   :  { %584 = vtanh.f32 %v247_v13 }
  0xba   :  { %v229_v14 = vpop.f32.mrf.mxu0 }
  0xbb   :  { %v230_v15 = vadd.f32 %v229_v14, %v121_v7  ;;  %v243_v16 = vpop.f32.mrf.mxu1 }
  0xbd   :  { %v244_v17 = vadd.f32 %v243_v16, %v230_v15 }
  0xbf   :  { %v248_v18 = vmul.f32 %v246_v12, %v244_v17  ;;  %v585_v20 = vpop.eup %584 }
  0xc0   :  { %v252_v21 = vmul.f32 %v585_v20, %v251_v19 }
  0xc1   :  { %586 = vtanh.f32 %v248_v18 }
  0xc2   :  { %v255_v25 = vadd.f32 %v254_v22, %v252_v21 }
  0xc7   :  { %v587_v23 = vpop.eup %586 }
  0xc8   :  { %v253_v24 = vmul.f32 %v587_v23, %v251_v19 }
  0xca   :  { %v256_v26 = vadd.f32 %v254_v22, %v253_v24 }
  0xcc   :  { %v257_v27 = vpack.c.bf16 %v256_v26, %v255_v25 }
  0xce   :  { %368 = vmatmul.bf16.vlgmr.msra.gmra.mxu2 %v257_v27  ;;  %382 = vmatmul.bf16.vlgmr.msra.gmra.mxu3 %v257_v27 }
 0x151   :  { %v369_v31 = vpop.f32.mrf.mxu2  ;;  %v383_v32 = vpop.f32.mrf.mxu3 }
 0x152   :  { %v370_v33 = vadd.f32 %v369_v31, %v276_v29  ;;  %v384_v34 = vadd.f32 %v383_v32, %v277_v30 }
 0x154   :  { %388 = vst [vmem:[#allocation10] sm:$0xff] %v370_v33 }
 0x155   :  { %389 = vst [vmem:[#allocation10 + $0x8] sm:$0xff] %v384_v34 }
 0x159   :  { %v371_v35 = vpop.f32.mrf.mxu2  ;;  %v385_v36 = vpop.f32.mrf.mxu3 }
 0x15a   :  { %v372_v37 = vadd.f32 %v371_v35, %v276_v29  ;;  %v386_v38 = vadd.f32 %v385_v36, %v277_v30 }
 0x15c   :  { %390 = vst [vmem:[#allocation10 + $0x10] sm:$0xff] %v372_v37 }
 0x15d   :  { %391 = vst [vmem:[#allocation10 + $0x18] sm:$0xff] %v386_v38 }
 0x15e   :  { %404 = dma.vmem_to_hbm [thread:$0]  %s397_s18, 512, %s399_s21, [#allocation4], %s720_s30, %s720_s30, %s721_s6  }
 0x15f   :  { %714 = dma.done.wait [#allocation4], 512  }
 0x160   :  { %715 = vsyncadd [#allocation4], 4294966784 }
 0x161   :  { %409 = vsyncpa [#allocation3], 1 }
 0x162   :  { %410 = vsyncpa [#allocation6], 1 }
 0x163   :  { %411 = vsyncpa [#allocation9], 1 }
 0x164   :  { %412 = vsyncpa [#allocation4], 1 }

</bundles_post_ra>
